<compile_context>
chip_gen: v6e
topology: v6e:2x2x1
jax: 0.10.0
libtpu: 0.0.40
codegen_flags: <defaults>
</compile_context>

<pallas_src>
import functools

import jax
import jax.numpy as jnp
from jax.experimental import pallas as pl
from jax.experimental.pallas import tpu as pltpu


def siam_kernel(member_ref, member_t_ref, params_ref, x_ref, o_ref, *, eps):
    x = x_ref[...].astype(jnp.float32)        # (B, C, HW)
    B, C, HW = x.shape
    member = member_ref[...]                  # (G, C) one-hot group membership
    member_t = member_t_ref[...]              # (C, G)
    params = params_ref[...]                  # (C, 8) packed parameters
    G = member.shape[0]
    cpg = C // G
    n = cpg * HW                              # elements per (sample, group)

    gw = params[:, 0:1]                       # gamma * softmax(gamma)   (C,1)
    bw = params[:, 1:2]                       # beta  * softmax(gamma)   (C,1)
    info = params[:, 2:3]                     # (wg > gate_threshold) as f32
    noninfo = params[:, 3:4]                  # 1 - info

    # ---- group statistics: one pass over the tile + two tiny MXU matmuls ----
    ch_sum = jnp.sum(x, axis=2)               # (B, C)
    ch_ss = jnp.sum(x * x, axis=2)            # (B, C)
    ch_stats = jnp.concatenate([ch_sum, ch_ss], axis=0)               # (2B, C)
    grp_stats = jnp.dot(ch_stats, member_t,
                        preferred_element_type=jnp.float32)           # (2B, G)
    bc_stats = jnp.dot(grp_stats, member,
                       preferred_element_type=jnp.float32)            # (2B, C)
    sum_c = bc_stats[:B][:, :, None]          # (B, C, 1) group sum per channel
    ss_c = bc_stats[B:][:, :, None]           # (B, C, 1) group sumsq / channel

    mean_c = sum_c * (1.0 / n)
    var_c = jnp.maximum(ss_c - sum_c * mean_c, 0.0) * (1.0 / (n - 1))
    std_c = jnp.sqrt(var_c)                   # unbiased, matches torch.std

    # ---- fold norm + affine + softmax-weighting into one per-channel FMA ----
    # sigmoid(((x-mean)/(std+eps)*gamma + beta) * wg) == sigmoid(x*a + b)
    a = gw / (std_c + eps)                    # (B, C, 1) -- per-channel only
    b = bw - mean_c * a                       # (B, C, 1)

    rx = jax.nn.sigmoid(x * a + b) * x        # reweights * S, computed once

    # ---- reconstruct: write swapped halves directly (no s1/s2/concat) ----
    half = C // 2
    top = info[:half] * rx[:, :half] + noninfo[half:] * rx[:, half:]
    bot = info[half:] * rx[:, half:] + noninfo[:half] * rx[:, :half]
    o_ref[:, :half, :] = top.astype(o_ref.dtype)
    o_ref[:, half:, :] = bot.astype(o_ref.dtype)


def _pick_batch_block(n_batch, per_sample_bytes, budget_bytes=8 * 2**20):
    """Largest divisor of n_batch whose per-array block fits the VMEM budget,
    keeping >=2 grid steps so "parallel" can shard across TensorCores."""
    max_b = max(1, int(budget_bytes // max(per_sample_bytes, 1)))
    if n_batch >= 2:
        max_b = min(max_b, max(1, n_batch // 2))
    best = 1
    for cand in range(1, min(n_batch, max_b) + 1):
        if n_batch % cand == 0:
            best = cand
    return best


def siam_forward(x, gamma, beta, *, group_num=16, gate_threshold=0.5,
                 eps=1e-10):
    N, C, H, W = x.shape
    HW = H * W
    assert C >= group_num and C % group_num == 0
    assert C % 2 == 0
    assert (C // group_num) * HW > 1          # torch.std divides by n-1

    x2 = x.reshape(N, C, HW)

    # Packed per-channel parameter tile: [gamma*wg, beta*wg, info_mask,
    # noninfo_mask, pad x4]  -> one DMA, constant block index.
    g = gamma.reshape(C).astype(jnp.float32)
    b = beta.reshape(C).astype(jnp.float32)
    wg = jax.nn.softmax(g, axis=0)            # softmax over channel dim
    info = (wg > gate_threshold).astype(jnp.float32)
    zeros = jnp.zeros_like(g)
    params = jnp.stack([g * wg, b * wg, info, 1.0 - info,
                        zeros, zeros, zeros, zeros], axis=1)   # (C, 8)

    # Precomputed one-hot group-membership matrices (hoisted out of kernel).
    cpg = C // group_num
    ch_group = jnp.arange(C, dtype=jnp.int32) // cpg
    member = (ch_group[None, :] ==
              jnp.arange(group_num, dtype=jnp.int32)[:, None]
              ).astype(jnp.float32)           # (G, C)
    member_t = member.T                       # (C, G)

    itemsize = jnp.dtype(x.dtype).itemsize
    B = _pick_batch_block(N, C * HW * itemsize)
    block_bytes = B * C * HW * itemsize
    # in + out, double-buffered, plus params / small scratch headroom.
    need_bytes = 4 * block_bytes + 2 * 2**20
    cp_kwargs = dict(dimension_semantics=("parallel",))
    if need_bytes > 16 * 2**20:
        cp_kwargs["vmem_limit_bytes"] = int(need_bytes)
    # TODO(synk): for very large H*W where even a single-sample (1, C, HW)
    # block exceeds the VMEM budget, add an HW-tiling "arbitrary" grid axis
    # that accumulates per-group sum/sumsq before the normalize/gating pass.

    kernel = functools.partial(siam_kernel, eps=eps)
    out = pl.pallas_call(
        kernel,
        out_shape=jax.ShapeDtypeStruct((N, C, HW), x.dtype),
        grid=(N // B,),
        in_specs=[
            pl.BlockSpec((group_num, C), lambda n: (0, 0)),
            pl.BlockSpec((C, group_num), lambda n: (0, 0)),
            pl.BlockSpec((C, 8), lambda n: (0, 0)),
            pl.BlockSpec((B, C, HW), lambda n: (n, 0, 0)),
        ],
        out_specs=pl.BlockSpec((B, C, HW), lambda n: (n, 0, 0)),
        compiler_params=pltpu.CompilerParams(**cp_kwargs),
    )(member, member_t, params, x2)
    return out.reshape(N, C, H, W)


def siam_ref(x, gamma, beta, *, group_num=16, gate_threshold=0.5, eps=1e-10):
    """Pure-JAX reference mirroring the PyTorch module semantics."""
    N, C, H, W = x.shape
    xg = x.reshape(N, group_num, -1)
    n = xg.shape[2]
    mean = xg.mean(axis=2, keepdims=True)
    std = jnp.sqrt(jnp.sum((xg - mean) ** 2, axis=2, keepdims=True) / (n - 1))
    xn = ((xg - mean) / (std + eps)).reshape(N, C, H, W)
    g = gamma.reshape(1, C, 1, 1)
    b = beta.reshape(1, C, 1, 1)
    gn = xn * g + b
    wg = jax.nn.softmax(gamma.reshape(C), axis=0).reshape(1, C, 1, 1)
    rew = jax.nn.sigmoid(gn * wg)
    info = (wg > gate_threshold).astype(x.dtype)
    s1 = info * rew * x
    s2 = (1.0 - info) * rew * x
    half = C // 2
    return jnp.concatenate([s1[:, :half] + s2[:, half:],
                            s1[:, half:] + s2[:, :half]], axis=1)


if __name__ == "__main__":
    N, C, H, W = 2, 32, 16, 16
    GROUP_NUM = 16

    key = jax.random.PRNGKey(0)
    kx, kg = jax.random.split(key)
    x = jax.random.normal(kx, (N, C, H, W), dtype=jnp.float32)
    gamma = jax.random.normal(kg, (C, 1, 1), dtype=jnp.float32)  # torch.randn
    beta = jnp.zeros((C, 1, 1), dtype=jnp.float32)               # torch.zeros

    out = siam_forward(x, gamma, beta, group_num=GROUP_NUM)
    out = jax.block_until_ready(out)

    ref = siam_ref(x, gamma, beta, group_num=GROUP_NUM)
    assert out.shape == (N, C, H, W)
    assert jnp.allclose(out, ref, atol=3e-5, rtol=3e-5)

    print("KERNEL_OK")
</pallas_src>

<mosaic_0001>
module attributes {stable_mosaic.version = 11 : i64} {
  func.func @siam_kernel(%arg0: i32, %arg1: memref<16x32xf32, #tpu.memory_space<vmem>>, %arg2: memref<32x16xf32, #tpu.memory_space<vmem>>, %arg3: memref<32x8xf32, #tpu.memory_space<vmem>>, %arg4: memref<1x32x256xf32, #tpu.memory_space<vmem>>, %arg5: memref<1x32x256xf32, #tpu.memory_space<vmem>>) attributes {dimension_semantics = [#tpu.dimension_semantics<parallel>], iteration_bounds = array<i64: 2>, scalar_prefetch = 0 : i64, scratch_operands = 0 : i64, tpu.core_type = #tpu.core_type<tc>, window_params = [{pipeline_mode = #tpu.pipeline_mode<synchronous>, transform_indices = @transform_0, window_bounds = array<i64: 16, 32>}, {pipeline_mode = #tpu.pipeline_mode<synchronous>, transform_indices = @transform_1, window_bounds = array<i64: 32, 16>}, {pipeline_mode = #tpu.pipeline_mode<synchronous>, transform_indices = @transform_2, window_bounds = array<i64: 32, 8>}, {transform_indices = @transform_3, window_bounds = array<i64: 1, 32, 256>}, {transform_indices = @transform_4, window_bounds = array<i64: 1, 32, 256>}]} {
    %c0 = arith.constant 0 : index
    %c0_0 = arith.constant 0 : index
    %c0_1 = arith.constant 0 : index
    %0 = vector.load %arg4[%c0, %c0_0, %c0_1] : memref<1x32x256xf32, #tpu.memory_space<vmem>>, vector<1x32x256xf32>
    %c0_2 = arith.constant 0 : index
    %c0_3 = arith.constant 0 : index
    %1 = vector.load %arg1[%c0_2, %c0_3] : memref<16x32xf32, #tpu.memory_space<vmem>>, vector<16x32xf32>
    %c0_4 = arith.constant 0 : index
    %c0_5 = arith.constant 0 : index
    %2 = vector.load %arg2[%c0_4, %c0_5] : memref<32x16xf32, #tpu.memory_space<vmem>>, vector<32x16xf32>
    %c0_6 = arith.constant 0 : index
    %c0_7 = arith.constant 0 : index
    %3 = vector.load %arg3[%c0_6, %c0_7] : memref<32x8xf32, #tpu.memory_space<vmem>>, vector<32x8xf32>
    %4 = vector.extract_strided_slice %3 {offsets = [0, 0], sizes = [32, 1], strides = [1, 1]} : vector<32x8xf32> to vector<32x1xf32>
    %5 = vector.extract_strided_slice %3 {offsets = [0, 1], sizes = [32, 1], strides = [1, 1]} : vector<32x8xf32> to vector<32x1xf32>
    %6 = vector.extract_strided_slice %3 {offsets = [0, 2], sizes = [32, 1], strides = [1, 1]} : vector<32x8xf32> to vector<32x1xf32>
    %7 = vector.extract_strided_slice %3 {offsets = [0, 3], sizes = [32, 1], strides = [1, 1]} : vector<32x8xf32> to vector<32x1xf32>
    %cst = arith.constant dense<0.000000e+00> : vector<1x32xf32>
    %8 = vector.multi_reduction <add>, %0, %cst [2] : vector<1x32x256xf32> to vector<1x32xf32>
    %9 = arith.mulf %0, %0 : vector<1x32x256xf32>
    %cst_8 = arith.constant dense<0.000000e+00> : vector<1x32xf32>
    %10 = vector.multi_reduction <add>, %9, %cst_8 [2] : vector<1x32x256xf32> to vector<1x32xf32>
    %11 = tpu.concatenate %8, %10 in 0 : vector<1x32xf32>, vector<1x32xf32> -> vector<2x32xf32>
    %cst_9 = arith.constant dense<0.000000e+00> : vector<2x16xf32>
    %12 = tpu.matmul %11, %2, %cst_9 {dimension_numbers = #tpu.dot_dimension_numbers<[1], [0], [0], [1], [0, 0, 1, 1], [], []>} : vector<2x32xf32>, vector<32x16xf32>, vector<2x16xf32> -> vector<2x16xf32>
    %cst_10 = arith.constant dense<0.000000e+00> : vector<2x32xf32>
    %13 = tpu.matmul %12, %1, %cst_10 {dimension_numbers = #tpu.dot_dimension_numbers<[1], [0], [0], [1], [0, 0, 1, 1], [], []>} : vector<2x16xf32>, vector<16x32xf32>, vector<2x32xf32> -> vector<2x32xf32>
    %14 = vector.extract_strided_slice %13 {offsets = [0, 0], sizes = [1, 32], strides = [1, 1]} : vector<2x32xf32> to vector<1x32xf32>
    %15 = vector.shape_cast %14 : vector<1x32xf32> to vector<1x32x1xf32>
    %16 = vector.extract_strided_slice %13 {offsets = [1, 0], sizes = [1, 32], strides = [1, 1]} : vector<2x32xf32> to vector<1x32xf32>
    %17 = vector.shape_cast %16 : vector<1x32xf32> to vector<1x32x1xf32>
    %cst_11 = arith.constant 0.001953125 : f32
    %18 = vector.broadcast %cst_11 : f32 to vector<1x32x1xf32>
    %19 = arith.mulf %15, %18 : vector<1x32x1xf32>
    %20 = arith.mulf %15, %19 : vector<1x32x1xf32>
    %21 = arith.subf %17, %20 : vector<1x32x1xf32>
    %cst_12 = arith.constant 0.000000e+00 : f32
    %22 = vector.broadcast %cst_12 : f32 to vector<1x32x1xf32>
    %23 = arith.maximumf %21, %22 : vector<1x32x1xf32>
    %cst_13 = arith.constant 0.00195694715 : f32
    %24 = vector.broadcast %cst_13 : f32 to vector<1x32x1xf32>
    %25 = arith.mulf %23, %24 : vector<1x32x1xf32>
    %26 = math.sqrt %25 : vector<1x32x1xf32>
    %cst_14 = arith.constant 1.000000e-10 : f32
    %27 = vector.broadcast %cst_14 : f32 to vector<1x32x1xf32>
    %28 = arith.addf %26, %27 : vector<1x32x1xf32>
    %29 = vector.shape_cast %4 : vector<32x1xf32> to vector<1x32x1xf32>
    %30 = arith.divf %29, %28 : vector<1x32x1xf32>
    %31 = arith.mulf %19, %30 : vector<1x32x1xf32>
    %32 = vector.shape_cast %5 : vector<32x1xf32> to vector<1x32x1xf32>
    %33 = arith.subf %32, %31 : vector<1x32x1xf32>
    %34 = vector.broadcast %30 : vector<1x32x1xf32> to vector<1x32x256xf32>
    %35 = arith.mulf %0, %34 : vector<1x32x256xf32>
    %36 = vector.broadcast %33 : vector<1x32x1xf32> to vector<1x32x256xf32>
    %37 = arith.addf %35, %36 : vector<1x32x256xf32>
    %38 = arith.negf %37 : vector<1x32x256xf32>
    %39 = math.exp %38 : vector<1x32x256xf32>
    %cst_15 = arith.constant 1.000000e+00 : f32
    %40 = vector.broadcast %cst_15 : f32 to vector<1x32x256xf32>
    %41 = arith.addf %40, %39 : vector<1x32x256xf32>
    %42 = arith.divf %40, %41 : vector<1x32x256xf32>
    %43 = arith.mulf %42, %0 : vector<1x32x256xf32>
    %44 = vector.extract_strided_slice %6 {offsets = [0, 0], sizes = [16, 1], strides = [1, 1]} : vector<32x1xf32> to vector<16x1xf32>
    %45 = vector.extract_strided_slice %43 {offsets = [0, 0, 0], sizes = [1, 16, 256], strides = [1, 1, 1]} : vector<1x32x256xf32> to vector<1x16x256xf32>
    %46 = vector.shape_cast %44 : vector<16x1xf32> to vector<1x16x1xf32>
    %47 = vector.broadcast %46 : vector<1x16x1xf32> to vector<1x16x256xf32>
    %48 = arith.mulf %47, %45 : vector<1x16x256xf32>
    %49 = vector.extract_strided_slice %7 {offsets = [16, 0], sizes = [16, 1], strides = [1, 1]} : vector<32x1xf32> to vector<16x1xf32>
    %50 = vector.extract_strided_slice %43 {offsets = [0, 16, 0], sizes = [1, 16, 256], strides = [1, 1, 1]} : vector<1x32x256xf32> to vector<1x16x256xf32>
    %51 = vector.shape_cast %49 : vector<16x1xf32> to vector<1x16x1xf32>
    %52 = vector.broadcast %51 : vector<1x16x1xf32> to vector<1x16x256xf32>
    %53 = arith.mulf %52, %50 : vector<1x16x256xf32>
    %54 = arith.addf %48, %53 : vector<1x16x256xf32>
    %55 = vector.extract_strided_slice %6 {offsets = [16, 0], sizes = [16, 1], strides = [1, 1]} : vector<32x1xf32> to vector<16x1xf32>
    %56 = vector.extract_strided_slice %43 {offsets = [0, 16, 0], sizes = [1, 16, 256], strides = [1, 1, 1]} : vector<1x32x256xf32> to vector<1x16x256xf32>
    %57 = vector.shape_cast %55 : vector<16x1xf32> to vector<1x16x1xf32>
    %58 = vector.broadcast %57 : vector<1x16x1xf32> to vector<1x16x256xf32>
    %59 = arith.mulf %58, %56 : vector<1x16x256xf32>
    %60 = vector.extract_strided_slice %7 {offsets = [0, 0], sizes = [16, 1], strides = [1, 1]} : vector<32x1xf32> to vector<16x1xf32>
    %61 = vector.extract_strided_slice %43 {offsets = [0, 0, 0], sizes = [1, 16, 256], strides = [1, 1, 1]} : vector<1x32x256xf32> to vector<1x16x256xf32>
    %62 = vector.shape_cast %60 : vector<16x1xf32> to vector<1x16x1xf32>
    %63 = vector.broadcast %62 : vector<1x16x1xf32> to vector<1x16x256xf32>
    %64 = arith.mulf %63, %61 : vector<1x16x256xf32>
    %65 = arith.addf %59, %64 : vector<1x16x256xf32>
    %c0_16 = arith.constant 0 : index
    %c0_17 = arith.constant 0 : index
    %c0_18 = arith.constant 0 : index
    %66 = vector.load %arg5[%c0_16, %c0_17, %c0_18] : memref<1x32x256xf32, #tpu.memory_space<vmem>>, vector<1x16x256xf32>
    tpu.vector_store %arg5[%c0_16, %c0_17, %c0_18], %54 {strides = array<i32>} : memref<1x32x256xf32, #tpu.memory_space<vmem>>, vector<1x16x256xf32>,
    %c0_19 = arith.constant 0 : index
    %c16 = arith.constant 16 : index
    %c0_20 = arith.constant 0 : index
    %67 = vector.load %arg5[%c0_19, %c16, %c0_20] : memref<1x32x256xf32, #tpu.memory_space<vmem>>, vector<1x16x256xf32>
    tpu.vector_store %arg5[%c0_19, %c16, %c0_20], %65 {strides = array<i32>} : memref<1x32x256xf32, #tpu.memory_space<vmem>>, vector<1x16x256xf32>,
    return
  }
  func.func @transform_0(%arg0: i32) -> (i32, i32) {
    %c0_i32 = arith.constant 0 : i32
    %c0_i32_0 = arith.constant 0 : i32
    %c0_i32_1 = arith.constant 0 : i32
    return %c0_i32, %c0_i32_0 : i32, i32
  }
  func.func @transform_1(%arg0: i32) -> (i32, i32) {
    %c0_i32 = arith.constant 0 : i32
    %c0_i32_0 = arith.constant 0 : i32
    %c0_i32_1 = arith.constant 0 : i32
    return %c0_i32, %c0_i32_0 : i32, i32
  }
  func.func @transform_2(%arg0: i32) -> (i32, i32) {
    %c0_i32 = arith.constant 0 : i32
    %c0_i32_0 = arith.constant 0 : i32
    %c0_i32_1 = arith.constant 0 : i32
    return %c0_i32, %c0_i32_0 : i32, i32
  }
  func.func @transform_3(%arg0: i32) -> (i32, i32, i32) {
    %c0_i32 = arith.constant 0 : i32
    %c0_i32_0 = arith.constant 0 : i32
    %c0_i32_1 = arith.constant 0 : i32
    return %arg0, %c0_i32, %c0_i32_0 : i32, i32, i32
  }
  func.func @transform_4(%arg0: i32) -> (i32, i32, i32) {
    %c0_i32 = arith.constant 0 : i32
    %c0_i32_0 = arith.constant 0 : i32
    %c0_i32_1 = arith.constant 0 : i32
    return %arg0, %c0_i32, %c0_i32_0 : i32, i32, i32
  }
}

</mosaic_0001>

<bundles_post_ra>
// kernel: tpu_custom_call.1
= control target key start
LH: loop header
LB: loop body
LE: loop exit
PB: predicated region body
PF: predicated region fallthrough
CT: control target
= control target key end

     0   :  { %9 = vsyncpa [#allocation3], 0  ;;  %s1424_s0 = inlined_call_operand.vmem [shape: f32[16,32], index: 0, kind: input, shape index: {}]   ;;  %s1425_s1 = inlined_call_operand.vmem [shape: f32[32,16], index: 1, kind: input, shape index: {}]   ;;  %s1426_s2 = inlined_call_operand.vmem [shape: f32[32,8], index: 2, kind: input, shape index: {}]   ;;  %s1427_s3 = inlined_call_operand.hbm [shape: f32[2,32,256], index: 3, kind: input, shape index: {}]   ;;  %s1428_s4 = inlined_call_operand.hbm [shape: f32[2,32,256], index: 4, kind: output, shape index: {}]  }
   0x1   :  { %11 = vsyncpa [#allocation3 + $0x1], 0 }
   0x2   :  { %12 = vsyncpa [#allocation4], 0 }
   0x3   :  { %14 = vsyncpa [#allocation4 + $0x1], 0  ;;  %s1160_s15 = smov 0   ;;  %s1162_s16 = smov 0  }
   0x4   :  { %s1164_s17 = smov 0   ;;  %s1166_s18 = smov 0  }
   0x5 LB: > { %s1181_s19 = sadd.s32 4294967295, %s1120_s18   ;;  %s861_s20 = sadd.s32 4294967294, %s1120_s18   ;;  %s1120_s18 = sphi %s1166_s18, %s1443_s18   ;;  %s1116_s17 = sphi %s1164_s17, %s1442_s17   ;;  %s1112_s16 = sphi %s1162_s16, %s1441_s16   ;;  %s1108_s15 = sphi %s1160_s15, %s1440_s15  }
   0x6   : > { %s1185_s21 = sadd.s32 1, %s1120_s18   ;;  %s90_s22 = sadd.s32 1, %s1116_s17 }
   0x7   : > { %s87_s23 = ssub.s32 %s1120_s18, %s1185_s21  ;;  %p97_p0 = scmp.ne.s32.totalorder %s1116_s17, %s1112_s16 }
   0x8   : > { %p88_p1 = scmp.eq.s32.totalorder %s87_s23, 0  ;;  %p98_p2 = scmp.eq.s32.totalorder %s1120_s18, 0 }
   0x9   : > { %p103_p3 = scmp.ne.s32.totalorder %s1112_s16, %s1108_s15  ;;  %p104_p4 = scmp.eq.s32.totalorder %s1181_s19, 0 }
   0xa   : > { %s1197_s24 = scalar_select %p88_p1, %s1116_s17, %s90_s22  }
   0xb   : > { %p1199_p5 = por %p98_p2, %p97_p0  ;;  %p1203_p6 = por %p104_p4, %p103_p3 }
   0xc   : > { %p127_p7 = scmp.eq.s32.totalorder %s1181_s19, 1  ;;  %p133_p8 = scmp.eq.s32.totalorder %s861_s20, 1 }
   0xd   : > { %s1432_s26 = scalar_select %p1203_p6, 1, 0 }
   0xe   : > { %p925_p10 = scmp.lt.s32.totalorder %s1120_s18, 2  ;;  %p1210_p11 = por %p127_p7, %p97_p0 }
   0xf   : > { %p1214_p12 = por %p133_p8, %p103_p3  ;;  %s162_s29 = sand.u32 1, %s1116_s17  }
  0x10   : > { %s1433_s27 = scalar_select %p1210_p11, 1, 0 }
  0x11   : > { %s1434_s28 = scalar_select %p1214_p12, 1, 0 }
  0x12   : > { %s885_s30 = sshll.u32 %s1120_s18, 10  ;;  %s864_s5 = sshll.u32 %s162_s29, 6 }
  0x13   : > { %s1223_s8 = scalar_lea.hbm %s1427_s3, %s885_s30  ;;  %s166_s9 = scalar_lea.vmem [#allocation2], %s864_s5 }
  0x14   : > { %s173_s10 = sshll.u32 %s166_s9, 4  ;;  %p1227_p13 = pnand %p925_p10, %p1199_p5  ;;  %s1231_s10 = int_to_ptr.vmem [resolvable:$true] %s173_s10 }
  0x15   : > { %s1233_s12 = scalar_lea.sflag [#allocation3], %s162_s29  ;;  %s1028_s13 = scalar_lea.hbm %s1223_s8, 1024 }
  0x16   : > { %p1029_p0 = scmp.ne.s32.totalorder %s1223_s8, %s1028_s13  ;;  %p1030_p1 = pneg %p1227_p13 }
  0x17   : > { %s1033_s22 = scalar_lea.hbm %s1427_s3, 2048  ;;  %p1034_p4 = scmp.lt.s32.totalorder %s1223_s8, %s1427_s3 }
  0x18   : > { %p1031_p2 = pnand %p1030_p1, %p1029_p0  ;;  %p1035_p5 = scmp.lt.s32.totalorder %s1033_s22, %s1028_s13 }
  0x1a   : > { %p1032_p3 = pneg %p1031_p2  ;;  %p1036_p7 = por %p1035_p5, %p1034_p4 }
  0x1c   : > { %p1037_p8 = pnand %p1036_p7, %p1032_p3 }
  0x1e   : > { %1040 = shalt.err (!%p1037_p8)
}
  0x1f   : > { %s1041_s29 = scalar_lea.vmem %s1231_s10, 1024  ;;  %s1122_s30 = smov [#allocation2]  }
  0x20   : > { %p1042_p10 = scmp.ne.s32.totalorder %s1231_s10, %s1041_s29  ;;  %s1046_s5 = sshll.u32 %s1122_s30, 4  ;;  %s1047_s5 = int_to_ptr.vmem [resolvable:$false] %s1046_s5 }
  0x21   : > { %s1048_s6 = scalar_lea.vmem %s1047_s5, 2048  ;;  %p1049_p2 = scmp.lt.s32.totalorder %s1231_s10, %s1047_s5 }
  0x22   : > { %p1044_p9 = pnand %p1042_p10, %p1030_p1  ;;  %p1050_p12 = scmp.lt.s32.totalorder %s1048_s6, %s1041_s29 }
  0x24   : > { %p1045_p0 = pneg %p1044_p9  ;;  %p1051_p11 = por %p1050_p12, %p1049_p2 }
  0x26   : > { %p1052_p6 = pnand %p1051_p11, %p1045_p0 }
  0x28   : > { %1055 = shalt.err (!%p1052_p6)
}
  0x29   : > { %s1123_s7 = smov 256   ;;  %s1124_s9 = smov 16  }
  0x2a   : > { %920 = dma.hbm_to_vmem [thread:$0]  (!%p1227_p13), %s1223_s8, 1024, %s1231_s10, %s1233_s12, %s1123_s7, %s1123_s7, %s1124_s9  }
  0x2b   : > { %p867_p9 = scmp.ge.s32.totalorder %s1120_s18, 1  ;;  %p181_p1 = scmp.lt.s32.totalorder %s1120_s18, 3 }
  0x2d   : > { %p182_p3 = pnand %p867_p9, %p181_p1 }
  0x2e   : > { %s1257_s13 = sand.u32 (!%p182_p3), 1, %s1112_s16   ;;  %p1436_p6 = scmp.ne.s32.totalorder (!%p182_p3), %s1432_s26, 0 }
  0x2f   : > { %185 = sbr.rel (%p182_p3) target bundleno = 1071 (0x42f), region = 36  ;;  %s868_s14 = sshll.u32 (!%p182_p3), %s1257_s13, 6 }
  0x30   : > { %s188_s20 = scalar_lea.sflag (!%p182_p3), [#allocation3], %s1257_s13  ;;  %s191_s22 = scalar_lea.vmem (!%p182_p3), [#allocation2], %s868_s14 }
  0x34   : > { %1099 = dma.done.wait (%p1436_p6), %s188_s20, 1024  }
  0x35   : > { %1101 = vsyncadd (%p1436_p6), %s188_s20, 4294966272  ;;  %v1267_v0 = vld [vmem:[%s191_s22] sm:$0xff]  ;;  %v1269_v1 = vld [vmem:[%s191_s22 + $0x8] sm:$0xff]  ;;  %v1125_v24 = vmov 0.0   ;;  %vm1126_vm0 = vmmov 0   ;;  %v270_v30 = vlaneseq  ;;  %vm281_vm1 = vcmask 130112  }
  0x36   : > { %v1271_v2 = vld [vmem:[%s191_s22 + $0x10] sm:$0xff]  ;;  %v234_v3 = vadd.f32 %v1269_v1, %v1267_v0  ;;  %v246_v4 = vmul.f32 %v1267_v0, %v1267_v0  ;;  %v247_v5 = vmul.f32 %v1269_v1, %v1269_v1  ;;  %v1279_v6 = vld [vmem:[%s191_s22 + $0x18] sm:$0xff]  ;;  %v1285_v9 = vld [vmem:[%s191_s22 + $0x20] sm:$0xff]  ;;  %895 = vmatprep.subr.mxu0 %v1125_v24  ;;  %906 = vmatprep.subr.mxu1 %v1125_v24  ;;  %vm288_vm2 = vcmask 195712   ;;  %s1128_s8 = smov 1   ;;  %s215_s25 = scalar_lea.vmem [#allocation5], %s868_s14 }
  0x37   : > { %v248_v7 = vmul.f32 %v1271_v2, %v1271_v2  ;;  %v249_v8 = vmul.f32 %v1279_v6, %v1279_v6  ;;  %v1287_v10 = vld [vmem:[%s191_s22 + $0x28] sm:$0xff]  ;;  %v237_v12 = vadd.f32 %v1279_v6, %v1271_v2  ;;  %v250_v14 = vmul.f32 %v1285_v9, %v1285_v9  ;;  %v1295_v16 = vld [vmem:[%s191_s22 + $0x30] sm:$0xff]  ;;  %v1297_v17 = vld [vmem:[%s191_s22 + $0x38] sm:$0xff]  ;;  %903 = vmatprep.mubr.msk.f32.mxu0 %vm1126_vm0, %v1125_v24  ;;  %s886_s29 = sshll.u32 %s1181_s19, 10  ;;  %s788_s30 = sshll.u32 %s215_s25, 4  ;;  %s1381_s30 = int_to_ptr.vmem [resolvable:$true] %s788_s30 }
  0x38   : > { %235 = vadd.xlane.f32.xlu0 %v234_v3  ;;  %v254_v11 = vadd.f32 %v247_v5, %v246_v4  ;;  %v251_v15 = vmul.f32 %v1287_v10, %v1287_v10  ;;  %v240_v18 = vadd.f32 %v1287_v10, %v1285_v9  ;;  %v252_v20 = vmul.f32 %v1295_v16, %v1295_v16  ;;  %v229_v25 = vld [vmem:[%s1425_s1 + $0x18] sm:$0xff]  ;;  %v228_v26 = vld [vmem:[%s1425_s1 + $0x10] sm:$0xff]  ;;  %v227_v27 = vld [vmem:[%s1425_s1 + $0x8] sm:$0xff]  ;;  %s1379_s6 = scalar_lea.hbm %s1428_s4, %s886_s29  ;;  %s775_s19 = scalar_lea.sflag [#allocation4], %s1257_s13 }
  0x39   : > { %v257_v13 = vadd.f32 %v249_v8, %v248_v7  ;;  %v253_v21 = vmul.f32 %v1297_v17, %v1297_v17  ;;  %v243_v22 = vadd.f32 %v1297_v17, %v1295_v16  ;;  %896 = vmatpush3.msra.mxu0 %v229_v25  ;;  %v226_v28 = vld [vmem:[%s1425_s1] sm:$0xff]  ;;  %v225_v29 = vld [vmem:[%s1424_s0 + $0x8] sm:$0xff]  ;;  %910 = vmatprep.mubr.msk.f32.mxu1 %vm1126_vm0, %v1125_v24  ;;  %v271_v31 = vand.u32 127, %v270_v30  ;;  %s1056_s7 = scalar_lea.vmem %s1381_s30, 1024  ;;  %p1437_p12 = scmp.ne.s32.totalorder %s1433_s27, 0 }
  0x3a   : > { %255 = vadd.xlane.f32.xlu1 %v254_v11  ;;  %v260_v19 = vadd.f32 %v251_v15, %v250_v14  ;;  %897 = vmatprep.subr.mxu0 %v1125_v24  ;;  %v273_v37 = vshrl.u32 %v270_v30, 7  ;;  %vm295_vm3 = vcmask 261312   ;;  %vm322_vm4 = vcmask 1040384   ;;  %v224_v63 = vld [vmem:[%s1424_s0] sm:$0xff]  ;;  %p1057_p11 = scmp.ne.s32.totalorder %s1381_s30, %s1056_s7  ;;  %s1132_s9 = smov [#allocation5]  }
  0x3b   : > { %v263_v23 = vadd.f32 %v253_v21, %v252_v20  ;;  %898 = vmatpush3.msra.mxu0 %v228_v26  ;;  %907 = vmatpush3.msra.mxu1 %v225_v29  ;;  %v276_v34 = vadd.s32 4294967288, %v271_v31  ;;  %v283_v36 = vadd.s32 4294967280, %v271_v31  ;;  %v290_v38 = vadd.s32 4294967272, %v271_v31  ;;  %s1060_s20 = sshll.u32 %s1132_s9, 4  ;;  %s1061_s20 = int_to_ptr.vmem [resolvable:$false] %s1060_s20 }
  0x3c   : > { %238 = vadd.xlane.f32.xlu0 %v237_v12  ;;  %899 = vmatprep.subr.mxu0 %v1125_v24  ;;  %v274_v43 = vsub.s32 %v271_v31, %v273_v37  ;;  %vm324_vm5 = vcmask 261120   ;;  %vm398_vm6 = vcmask 130048   ;;  %v474_v5 = vsub.s32 0, %v273_v37  ;;  %p1058_p13 = pnand %p1057_p11, %p1437_p12  ;;  %s1062_s22 = scalar_lea.vmem %s1061_s20, 2048 }
  0x3d   : > { %900 = vmatpush3.msra.mxu0 %v227_v27  ;;  %908 = vmatprep.subr.mxu1 %v1125_v24  ;;  %v279_v40 = vsub.s32 %v276_v34, %v273_v37  ;;  %v286_v41 = vsub.s32 %v283_v36, %v273_v37  ;;  %v293_v44 = vsub.s32 %v290_v38, %v273_v37  ;;  %v493_v11 = vsub.s32 1, %v273_v37  ;;  %p1063_p5 = scmp.lt.s32.totalorder %s1381_s30, %s1061_s20  ;;  %p1064_p7 = scmp.lt.s32.totalorder %s1062_s22, %s1056_s7 }
  0x3e   : > { %258 = vadd.xlane.f32.xlu1 %v257_v13  ;;  %901 = vmatprep.subr.mxu0 %v1125_v24  ;;  %v1127_v14 = vmov 0   ;;  %p1059_p4 = pneg %p1058_p13 }
  0x3f   : > { %902 = vmatpush3.msra.mxu0 %v226_v28  ;;  %909 = vmatpush3.msra.mxu1 %v224_v63  ;;  %p1065_p8 = por %p1064_p7, %p1063_p5 }
  0x40   : > { %241 = vadd.xlane.f32.xlu0 %v240_v18  ;;  %971 = vset.pattern.permute.xlu1 %v1127_v14 }
  0x41   : > { %970 = vset.pattern.permute.xlu0 %v1127_v14  ;;  %p1066_p10 = pnand %p1065_p8, %p1059_p4 }
  0x42   : > { %261 = vadd.xlane.f32.xlu1 %v260_v19 }
  0x44   : > { %244 = vadd.xlane.f32.xlu0 %v243_v22 }
  0x46   : > { %264 = vadd.xlane.f32.xlu1 %v263_v23 }
  0xc1   : > { %v236_v32 = vpop.xlane.xlu0 %235 }
  0xc2   : > { %v275_v51 = vrot.slane %v236_v32, %v274_v43 }
  0xc3   : > { %v256_v33 = vpop.xlane.xlu1 %255 }
  0xc4   : > { %v305_v52 = vrot.slane %v256_v33, %v274_v43 }
  0xc5   : > { %v239_v35 = vpop.xlane.xlu0 %238 }
  0xc6   : > { %v280_v46 = vrot.slane %v239_v35, %v279_v40 }
  0xc7   : > { %v259_v39 = vpop.xlane.xlu1 %258 }
  0xc8   : > { %v309_v47 = vrot.slane %v259_v39, %v279_v40  ;;  %v282_v55 = vsel %vm281_vm1, %v280_v46, %v275_v51 }
  0xc9   : > { %v242_v42 = vpop.xlane.xlu0 %241 }
  0xca   : > { %v287_v48 = vrot.slane %v242_v42, %v286_v41  ;;  %v310_v56 = vsel %vm281_vm1, %v309_v47, %v305_v52 }
  0xcb   : > { %v262_v45 = vpop.xlane.xlu1 %261 }
  0xcc   : > { %v314_v49 = vrot.slane %v262_v45, %v286_v41  ;;  %v289_v58 = vsel %vm288_vm2, %v287_v48, %v282_v55 }
  0xcd   : > { %v245_v50 = vpop.xlane.xlu0 %244 }
  0xce   : > { %v294_v53 = vrot.slane %v245_v50, %v293_v44  ;;  %v315_v59 = vsel %vm288_vm2, %v314_v49, %v310_v56 }
  0xcf   : > { %v265_v54 = vpop.xlane.xlu1 %264 }
  0xd0   : > { %v319_v57 = vrot.slane %v265_v54, %v293_v44  ;;  %v296_v60 = vsel %vm295_vm3, %v294_v53, %v289_v58 }
  0xd2   : > { %v320_v61 = vsel %vm295_vm3, %v319_v57, %v315_v59 }
  0xd3   : > { %v323_v62 = vsel %vm322_vm4, %v296_v60, %v320_v61 }
  0xd4   : > { %904 = vmatmul.mubr.msk.f32.vlgmr.msra.gmra.mxu0 %vm324_vm5, %v323_v62 }
 0x194   : > { %v394_v3 = vpop.f32.mrf.mxu0 }
 0x195   : > { %911 = vmatmul.mubr.msk.f32.vlgmr.msra.gmra.mxu1 %vm398_vm6, %v394_v3 }
 0x196   : > { %v905_v4 = vpop.f32.mrf.mxu0 }
 0x255   : > { %v468_v7 = vpop.f32.mrf.mxu1 }
 0x256   : > { %v475_v8 = vrot.slane %v468_v7, %v474_v5  ;;  %v494_v13 = vrot.slane %v468_v7, %v493_v11 }
 0x257   : > { %v912_v12 = vpop.f32.mrf.mxu1 }
 0x258   : > { %481 = vbcast.lane.b32.xlu1 %v475_v8, 264  ;;  %477 = vbcast.lane.b32.xlu0 %v475_v8, 256 }
 0x25c   : > { %485 = vbcast.lane.b32.xlu1 %v475_v8, 272  ;;  %496 = vbcast.lane.b32.xlu0 %v494_v13, 256 }
 0x260   : > { %489 = vbcast.lane.b32.xlu1 %v475_v8, 280  ;;  %504 = vbcast.lane.b32.xlu0 %v494_v13, 272  ;;  %v230_v8 = vld [vmem:[%s1426_s2] sm:$0xff] }
 0x264   : > { %500 = vbcast.lane.b32.xlu1 %v494_v13, 264 }
 0x268   : > { %508 = vbcast.lane.b32.xlu1 %v494_v13, 280 }
 0x2ca   : > { %v482_v15 = vpop.permute.xlu1 %481  ;;  %v478_v18 = vpop.permute.xlu0 %477 }
 0x2cb   : > { %v1325_v19 = vmul.f32 0.001953125, %v478_v18  ;;  %v1330_v25 = vmul.f32 0.001953125, %v482_v15 }
 0x2cd   : > { %v514_v20 = vmul.f32 %v1325_v19, %v478_v18  ;;  %v515_v32 = vmul.f32 %v1330_v25, %v482_v15  ;;  %v232_v15 = vld [vmem:[%s1426_s2 + $0x10] sm:$0xff] }
 0x2ce   : > { %v486_v21 = vpop.permute.xlu1 %485  ;;  %v497_v22 = vpop.permute.xlu0 %496 }
 0x2cf   : > { %v1328_v23 = vmul.f32 0.001953125, %v486_v21  ;;  %v518_v24 = vsub.f32 %v497_v22, %v514_v20 }
 0x2d1   : > { %v516_v26 = vmul.f32 %v1328_v23, %v486_v21  ;;  %v522_v27 = vmax.f32 %v518_v24, 0.0  ;;  %v231_v21 = vld [vmem:[%s1426_s2 + $0x8] sm:$0xff] }
 0x2d2   : > { %v490_v28 = vpop.permute.xlu1 %489  ;;  %v505_v29 = vpop.permute.xlu0 %504 }
 0x2d3   : > { %v526_v30 = vmul.f32 0.0019569471, %v522_v27  ;;  %v520_v31 = vsub.f32 %v505_v29, %v516_v26  ;;  %v1334_v33 = vmul.f32 0.001953125, %v490_v28 }
 0x2d5   : > { %980 = vrsqrt.f32 %v526_v30  ;;  %v524_v34 = vmax.f32 %v520_v31, 0.0  ;;  %v517_v38 = vmul.f32 %v1334_v33, %v490_v28  ;;  %vm532_vm7 = vcmp.eq.f32.partialorder %v526_v30, inf }
 0x2d6   : > { %v501_v35 = vpop.permute.xlu1 %500  ;;  %v535_v47 = vand.u32 2147483648, %v526_v30  ;;  %vm534_vm8 = vcmp.eq.f32.partialorder %v526_v30, 0.0  ;;  %v1129_v31 = vmov 1  }
 0x2d7   : > { %v519_v36 = vsub.f32 %v501_v35, %v515_v32  ;;  %v528_v37 = vmul.f32 0.0019569471, %v524_v34 }
 0x2d9   : > { %v523_v39 = vmax.f32 %v519_v36, 0.0  ;;  %982 = vrsqrt.f32 %v528_v37  ;;  %vm546_vm9 = vcmp.eq.f32.partialorder %v528_v37, inf  ;;  %v549_v53 = vand.u32 2147483648, %v528_v37 }
 0x2da   : > { %v509_v40 = vpop.permute.xlu1 %508  ;;  %vm548_vm10 = vcmp.eq.f32.partialorder %v528_v37, 0.0 }
 0x2db   : > { %v527_v41 = vmul.f32 0.0019569471, %v523_v39  ;;  %v521_v42 = vsub.f32 %v509_v40, %v517_v38  ;;  %v1130_v39 = vmov 2  }
 0x2dd   : > { %984 = vrsqrt.f32 %v527_v41  ;;  %v525_v43 = vmax.f32 %v521_v42, 0.0  ;;  %vm539_vm11 = vcmp.eq.f32.partialorder %v527_v41, inf  ;;  %v542_v58 = vand.u32 2147483648, %v527_v41 }
 0x2de   : > { %vm541_vm12 = vcmp.eq.f32.partialorder %v527_v41, 0.0 }
 0x2df   : > { %v529_v44 = vmul.f32 0.0019569471, %v525_v43 }
 0x2e1   : > { %986 = vrsqrt.f32 %v529_v44  ;;  %vm553_vm13 = vcmp.eq.f32.partialorder %v529_v44, inf  ;;  %v556_v4 = vand.u32 2147483648, %v529_v44  ;;  %vm555_vm14 = vcmp.eq.f32.partialorder %v529_v44, 0.0 }
 0x2e2   : > { %v981_v45 = vpop.eup %980 }
 0x2e3   : > { %v531_v46 = vmul.f32 %v981_v45, %v526_v30 }
 0x2e5   : > { %v533_v48 = vsel %vm532_vm7, %v526_v30, %v531_v46 }
 0x2e6   : > { %v536_v49 = vsel %vm534_vm8, %v535_v47, %v533_v48  ;;  %v983_v50 = vpop.eup %982 }
 0x2e7   : > { %v558_v51 = vadd.f32 1e-10, %v536_v49  ;;  %v545_v52 = vmul.f32 %v983_v50, %v528_v37 }
 0x2e9   : > { %988 = vrcp.f32 %v558_v51  ;;  %v547_v55 = vsel %vm546_vm9, %v528_v37, %v545_v52 }
 0x2ea   : > { %v985_v54 = vpop.eup %984  ;;  %v550_v57 = vsel %vm548_vm10, %v549_v53, %v547_v55 }
 0x2eb   : > { %v538_v56 = vmul.f32 %v985_v54, %v527_v41  ;;  %v560_v59 = vadd.f32 1e-10, %v550_v57 }
 0x2ed   : > { %v540_v60 = vsel %vm539_vm11, %v527_v41, %v538_v56  ;;  %990 = vrcp.f32 %v560_v59 }
 0x2ee   : > { %v543_v61 = vsel %vm541_vm12, %v542_v58, %v540_v60  ;;  %v987_v62 = vpop.eup %986 }
 0x2ef   : > { %v559_v63 = vadd.f32 1e-10, %v543_v61  ;;  %v552_v3 = vmul.f32 %v987_v62, %v529_v44 }
 0x2f1   : > { %992 = vrcp.f32 %v559_v63  ;;  %v554_v5 = vsel %vm553_vm13, %v529_v44, %v552_v3 }
 0x2f2   : > { %v557_v7 = vsel %vm555_vm14, %v556_v4, %v554_v5 }
 0x2f3   : > { %v561_v11 = vadd.f32 1e-10, %v557_v7 }
 0x2f5   : > { %994 = vrcp.f32 %v561_v11 }
 0x2f6   : > { %v989_v12 = vpop.eup %988 }
 0x2f7   : > { %v563_v13 = vmul.f32 %v989_v12, %v230_v8 }
 0x2f9   : > { %v570_v14 = vmul.f32 %v563_v13, %v1325_v19  ;;  %v233_v19 = vld [vmem:[%s1426_s2 + $0x18] sm:$0xff] }
 0x2fa   : > { %v991_v18 = vpop.eup %990 }
 0x2fb   : > { %578 = vrot.lane.b32.xlu0 %v570_v14, %s1128_s8  ;;  %v567_v20 = vmul.f32 %v991_v18, %v232_v15 }
 0x2fd   : > { %v572_v24 = vmul.f32 %v567_v20, %v1328_v23 }
 0x2fe   : > { %v993_v22 = vpop.eup %992 }
 0x2ff   : > { %v565_v26 = vmul.f32 %v993_v22, %v231_v21  ;;  %582 = vrot.lane.b32.xlu0 %v572_v24, %s1128_s8 }
 0x301   : > { %v571_v27 = vmul.f32 %v565_v26, %v1330_v25 }
 0x302   : > { %v995_v28 = vpop.eup %994 }
 0x303   : > { %580 = vrot.lane.b32.xlu1 %v571_v27, %s1128_s8  ;;  %596 = vperm.xlu0 %970, %v563_v13   ;;  %v569_v29 = vmul.f32 %v995_v28, %v233_v19 }
 0x305   : > { %v573_v30 = vmul.f32 %v569_v29, %v1334_v33  ;;  %v1131_v33 = vmov 3  }
 0x307   : > { %584 = vrot.lane.b32.xlu1 %v573_v30, %s1128_s8  ;;  %611 = vperm.xlu0 %970, %v569_v29  }
 0x30b   : > { %601 = vperm.xlu1 %971, %v565_v26   ;;  %973 = vset.pattern.permute.xlu0 %v1129_v31 }
 0x30f   : > { %606 = vperm.xlu1 %971, %v567_v20  }
 0x313   : > { %972 = vset.pattern.permute.xlu1 %v1129_v31 }
 0x36d   : > { %v579_v23 = vpop.permute.xlu0 %578 }
 0x36e   : > { %v590_v32 = vsub.f32 %v230_v8, %v579_v23 }
 0x370   : > { %624 = vperm.xlu1 %972, %v590_v32  }
 0x371   : > { %v583_v25 = vpop.permute.xlu0 %582 }
 0x372   : > { %v592_v34 = vsub.f32 %v232_v15, %v583_v25 }
 0x374   : > { %634 = vperm.xlu1 %972, %v592_v34  }
 0x375   : > { %v581_v35 = vpop.permute.xlu1 %580 }
 0x376   : > { %v591_v36 = vsub.f32 %v231_v21, %v581_v35 }
 0x378   : > { %629 = vperm.xlu0 %973, %v591_v36  }
 0x379   : > { %v585_v37 = vpop.permute.xlu1 %584 }
 0x37a   : > { %v593_v38 = vsub.f32 %v233_v19, %v585_v37 }
 0x37c   : > { %974 = vset.pattern.permute.xlu0 %v1130_v39  ;;  %639 = vperm.xlu1 %972, %v593_v38  }
 0x37d   : > { %708 = vperm.xlu0 %974, %v230_v8  }
 0x37e   : > { %v597_v41 = vpop.permute.xlu0 %596 }
 0x37f   : > { %v614_v43 = vmul.f32 %v597_v41, %v1267_v0  ;;  %v615_v44 = vmul.f32 %v597_v41, %v1269_v1 }
 0x380   : > { %975 = vset.pattern.permute.xlu1 %v1130_v39 }
 0x381   : > { %977 = vset.pattern.permute.xlu0 %v1131_v33  ;;  %713 = vperm.xlu1 %975, %v231_v21  }
 0x382   : > { %727 = vperm.xlu0 %977, %v233_v19   ;;  %v612_v50 = vpop.permute.xlu0 %611 }
 0x383   : > { %v620_v4 = vmul.f32 %v612_v50, %v1295_v16  ;;  %v621_v5 = vmul.f32 %v612_v50, %v1297_v17 }
 0x385   : > { %976 = vset.pattern.permute.xlu1 %v1131_v33 }
 0x386   : > { %751 = vperm.xlu0 %977, %v230_v8   ;;  %722 = vperm.xlu1 %976, %v232_v15   ;;  %v602_v40 = vpop.permute.xlu1 %601 }
 0x387   : > { %v616_v56 = vmul.f32 %v602_v40, %v1271_v2  ;;  %v617_v57 = vmul.f32 %v602_v40, %v1279_v6 }
 0x38a   : > { %978 = vset.pattern.permute.xlu1 %v1130_v39  ;;  %v607_v42 = vpop.permute.xlu1 %606 }
 0x38b   : > { %739 = vperm.xlu1 %978, %v232_v15   ;;  %v618_v51 = vmul.f32 %v607_v42, %v1285_v9  ;;  %v619_v52 = vmul.f32 %v607_v42, %v1287_v10 }
 0x38f   : > { %743 = vperm.xlu1 %978, %v233_v19  }
 0x393   : > { %979 = vset.pattern.permute.xlu1 %v1131_v33 }
 0x394   : > { %755 = vperm.xlu1 %979, %v231_v21  }
 0x3eb   : > { %v625_v45 = vpop.permute.xlu1 %624 }
 0x3ec   : > { %v642_v46 = vadd.f32 %v625_v45, %v614_v43  ;;  %v643_v47 = vadd.f32 %v625_v45, %v615_v44 }
 0x3ee   : > { %v872_v48 = vmul.f32 -1.442695, %v642_v46  ;;  %v873_v49 = vmul.f32 -1.442695, %v643_v47 }
 0x3ef   : > { %v635_v53 = vpop.permute.xlu1 %634 }
 0x3f0   : > { %996 = vpow2.f32 %v872_v48  ;;  %v646_v54 = vadd.f32 %v635_v53, %v618_v51  ;;  %v647_v55 = vadd.f32 %v635_v53, %v619_v52 }
 0x3f1   : > { %998 = vpow2.f32 %v873_v49 }
 0x3f2   : > { %v876_v58 = vmul.f32 -1.442695, %v646_v54  ;;  %v877_v59 = vmul.f32 -1.442695, %v647_v55 }
 0x3f3   : > { %v630_v60 = vpop.permute.xlu0 %629 }
 0x3f4   : > { %v644_v61 = vadd.f32 %v630_v60, %v616_v56  ;;  %v645_v62 = vadd.f32 %v630_v60, %v617_v57  ;;  %1000 = vpow2.f32 %v876_v58 }
 0x3f5   : > { %1002 = vpow2.f32 %v877_v59 }
 0x3f6   : > { %v874_v63 = vmul.f32 -1.442695, %v644_v61  ;;  %v875_v3 = vmul.f32 -1.442695, %v645_v62 }
 0x3f7   : > { %v640_v7 = vpop.permute.xlu1 %639 }
 0x3f8   : > { %1004 = vpow2.f32 %v874_v63  ;;  %v648_v8 = vadd.f32 %v640_v7, %v620_v4  ;;  %v649_v11 = vadd.f32 %v640_v7, %v621_v5  ;;  %v709_v30 = vpop.permute.xlu0 %708 }
 0x3f9   : > { %1006 = vpow2.f32 %v875_v3 }
 0x3fa   : > { %v878_v12 = vmul.f32 -1.442695, %v648_v8  ;;  %v879_v13 = vmul.f32 -1.442695, %v649_v11 }
 0x3fc   : > { %1008 = vpow2.f32 %v878_v12  ;;  %v1361_v22 = vpop.permute.xlu1 %713 }
 0x3fd   : > { %v997_v14 = vpop.eup %996  ;;  %1010 = vpow2.f32 %v879_v13  ;;  %v728_v36 = vpop.permute.xlu0 %727 }
 0x3fe   : > { %v999_v15 = vpop.eup %998  ;;  %v674_v18 = vadd.f32 1.0, %v997_v14 }
 0x3ff   : > { %v675_v20 = vadd.f32 1.0, %v999_v15 }
 0x400   : > { %1012 = vrcp.f32 %v674_v18 }
 0x401   : > { %v1001_v21 = vpop.eup %1000  ;;  %1014 = vrcp.f32 %v675_v20  ;;  %v723_v23 = vpop.permute.xlu1 %722 }
 0x402   : > { %v1003_v24 = vpop.eup %1002  ;;  %v678_v26 = vadd.f32 1.0, %v1001_v21  ;;  %v752_v42 = vpop.permute.xlu0 %751 }
 0x403   : > { %v679_v27 = vadd.f32 1.0, %v1003_v24 }
 0x404   : > { %1016 = vrcp.f32 %v678_v26 }
 0x405   : > { %v1005_v19 = vpop.eup %1004  ;;  %1018 = vrcp.f32 %v679_v27 }
 0x406   : > { %v1007_v28 = vpop.eup %1006  ;;  %v676_v29 = vadd.f32 1.0, %v1005_v19  ;;  %v740_v38 = vpop.permute.xlu1 %739 }
 0x407   : > { %v677_v31 = vadd.f32 1.0, %v1007_v28 }
 0x408   : > { %1020 = vrcp.f32 %v676_v29 }
 0x409   : > { %v1009_v32 = vpop.eup %1008  ;;  %1022 = vrcp.f32 %v677_v31 }
 0x40a   : > { %v1011_v25 = vpop.eup %1010  ;;  %v680_v34 = vadd.f32 1.0, %v1009_v32  ;;  %v744_v46 = vpop.permute.xlu1 %743 }
 0x40b   : > { %v681_v35 = vadd.f32 1.0, %v1011_v25 }
 0x40c   : > { %1024 = vrcp.f32 %v680_v34 }
 0x40d   : > { %v1013_v37 = vpop.eup %1012  ;;  %1026 = vrcp.f32 %v681_v35 }
 0x40e   : > { %v1015_v39 = vpop.eup %1014  ;;  %v698_v33 = vmul.f32 %v1013_v37, %v1267_v0 }
 0x40f   : > { %v699_v41 = vmul.f32 %v1015_v39, %v1269_v1  ;;  %v756_v60 = vpop.permute.xlu1 %755 }
 0x410   : > { %v716_v47 = vmul.f32 %v709_v30, %v698_v33  ;;  %v758_v50 = vmul.f32 %v752_v42, %v698_v33 }
 0x411   : > { %v1017_v40 = vpop.eup %1016  ;;  %v717_v52 = vmul.f32 %v709_v30, %v699_v41  ;;  %v759_v0 = vmul.f32 %v752_v42, %v699_v41 }
 0x412   : > { %v1019_v43 = vpop.eup %1018  ;;  %v702_v44 = vmul.f32 %v1017_v40, %v1285_v9 }
 0x413   : > { %v703_v45 = vmul.f32 %v1019_v43, %v1287_v10 }
 0x414   : > { %v730_v48 = vmul.f32 %v723_v23, %v702_v44  ;;  %v746_v49 = vmul.f32 %v740_v38, %v702_v44 }
 0x415   : > { %v1021_v51 = vpop.eup %1020  ;;  %v731_v53 = vmul.f32 %v723_v23, %v703_v45  ;;  %v747_v54 = vmul.f32 %v740_v38, %v703_v45 }
 0x416   : > { %v1023_v55 = vpop.eup %1022  ;;  %v734_v56 = vadd.f32 %v730_v48, %v716_v47  ;;  %v762_v1 = vadd.f32 %v758_v50, %v746_v49  ;;  %v700_v9 = vmul.f32 %v1021_v51, %v1271_v2 }
 0x417   : > { %v735_v57 = vadd.f32 %v731_v53, %v717_v52  ;;  %v763_v58 = vadd.f32 %v759_v0, %v747_v54  ;;  %v701_v59 = vmul.f32 %v1023_v55, %v1279_v6 }
 0x418   : > { %766 = vst [vmem:[%s215_s25] sm:$0xff] %v734_v56  ;;  %770 = vst [vmem:[%s215_s25 + $0x20] sm:$0xff] %v762_v1  ;;  %v718_v3 = vmul.f32 %v1361_v22, %v700_v9  ;;  %v760_v5 = vmul.f32 %v756_v60, %v700_v9 }
 0x419   : > { %v1025_v10 = vpop.eup %1024  ;;  %767 = vst [vmem:[%s215_s25 + $0x8] sm:$0xff] %v735_v57  ;;  %771 = vst [vmem:[%s215_s25 + $0x28] sm:$0xff] %v763_v58  ;;  %v719_v7 = vmul.f32 %v1361_v22, %v701_v59  ;;  %v761_v11 = vmul.f32 %v756_v60, %v701_v59 }
 0x41a   : > { %v1027_v61 = vpop.eup %1026  ;;  %v704_v62 = vmul.f32 %v1025_v10, %v1295_v16 }
 0x41b   : > { %v705_v63 = vmul.f32 %v1027_v61, %v1297_v17 }
 0x41c   : > { %v732_v2 = vmul.f32 %v728_v36, %v704_v62  ;;  %v748_v4 = vmul.f32 %v744_v46, %v704_v62 }
 0x41d   : > { %v733_v8 = vmul.f32 %v728_v36, %v705_v63  ;;  %v749_v6 = vmul.f32 %v744_v46, %v705_v63 }
 0x41e   : > { %v736_v12 = vadd.f32 %v732_v2, %v718_v3  ;;  %v764_v13 = vadd.f32 %v760_v5, %v748_v4 }
 0x41f   : > { %v737_v16 = vadd.f32 %v733_v8, %v719_v7  ;;  %v765_v17 = vadd.f32 %v761_v11, %v749_v6 }
 0x420   : > { %768 = vst [vmem:[%s215_s25 + $0x10] sm:$0xff] %v736_v12  ;;  %772 = vst [vmem:[%s215_s25 + $0x30] sm:$0xff] %v764_v13 }
 0x421   : > { %769 = vst [vmem:[%s215_s25 + $0x18] sm:$0xff] %v737_v16  ;;  %773 = vst [vmem:[%s215_s25 + $0x38] sm:$0xff] %v765_v17 }
 0x422   : > { %1069 = shalt.err (!%p1066_p10)
}
 0x423   : > { %s1070_s26 = scalar_lea.hbm %s1379_s6, 1024  ;;  %s1074_s11 = scalar_lea.hbm %s1428_s4, 2048 }
 0x424   : > { %p1071_p0 = scmp.ne.s32.totalorder %s1379_s6, %s1070_s26  ;;  %p1075_p1 = scmp.lt.s32.totalorder %s1379_s6, %s1428_s4 }
 0x425   : > { %p1076_p3 = scmp.lt.s32.totalorder %s1074_s11, %s1070_s26 }
 0x426   : > { %p1072_p2 = pnand %p1071_p0, %p1437_p12 }
 0x427   : > { %p1077_p6 = por %p1076_p3, %p1075_p1 }
 0x428   : > { %p1073_p9 = pneg %p1072_p2 }
 0x42a   : > { %p1078_p11 = pnand %p1077_p6, %p1073_p9 }
 0x42c   : > { %1081 = shalt.err (!%p1078_p11)
}
 0x42d   : > { %s1133_s25 = smov 256   ;;  %s1134_s29 = smov 16  }
 0x42e   : > { %915 = dma.vmem_to_hbm [thread:$0]  (%p1437_p12), %s1381_s30, 1024, %s1379_s6, %s775_s19, %s1133_s25, %s1133_s25, %s1134_s29  }
 0x42f PF: > { %s803_s14 = sand.u32 1, %s1108_s15   ;;  %p1438_p13 = scmp.ne.s32.totalorder %s1434_s28, 0 }
 0x430   : > { %p1439_p4 = scmp.ge.s32.totalorder %s1120_s18, 2  ;;  %s804_s5 = scalar_lea.sflag [#allocation4], %s803_s14 }
 0x432   : > { %p922_p5 = pnand %p1439_p4, %p1438_p13 }
 0x434   : > { %p923_p7 = pneg %p922_p5 }
 0x436   : > { %1103 = dma.done.wait (%p923_p7), %s804_s5, 1024  }
 0x437   : > { %1105 = vsyncadd (%p923_p7), %s804_s5, 4294966272  ;;  %p17_p8 = scmp.ge.s32.totalorder %s1185_s21, 4   ;;  %s1440_s15 = smov %s1112_s16 }
 0x438   : > { %s1441_s16 = smov %s1116_s17  ;;  %s1442_s17 = smov %s1197_s24 }
 0x439   : > { %s1443_s18 = smov %s1185_s21  ;;  %19 = sbr.rel (!%p17_p8) target bundleno = 5 (0x5), region = 81 }
 0x43e   :  { %809 = vsyncpa [#allocation3], 1 }
 0x43f   :  { %811 = vsyncpa [#allocation3 + $0x1], 1 }
 0x440   :  { %812 = vsyncpa [#allocation4], 1 }
 0x441   :  { %814 = vsyncpa [#allocation4 + $0x1], 1 }

</bundles_post_ra>
